<compile_context>
chip_gen: v6e
topology: v6e:2x2x1
jax: 0.10.0
libtpu: 0.0.40
codegen_flags: <defaults>
</compile_context>

<pallas_src>
import jax
import jax.numpy as jnp
from jax.experimental import pallas as pl
from jax.experimental.pallas import tpu as pltpu

# ------------------------- problem sizes (small) -----------------------------
B = 4                # batch
C = 4                # input channels
H = W = 16           # spatial
HW2 = H * W          # 256
CHW = C * H * W      # 1024
DIM = 32             # backbone feature dim (the `dim` of TaskMoE)
NCLS = (10, 6, 2)    # expert1 / expert2 / expert3 output widths
NPAD = 16            # padded class width per expert inside the fused output
NEXPERT = 3
LANES = 128          # fused lane width for gate + expert activations
NEG = -1e30
TB = 16              # batch rows per grid step (multiple of 16: bf16 sublane tile)

# column layout of the fused first-layer activation z (tb, 128):
#   cols   0:3    gate logits            (3 real, 3:32 exactly zero)
#   cols  32:64   expert-0 hidden
#   cols  64:96   expert-1 hidden
#   cols  96:128  expert-2 hidden
HID0 = 32

# row layout of the small f32 side slab wsmall (16, 128):
ROW_WCATP = 0        # rows 0:4   folded backbone+first-layer weight W_catp (C,128)
ROW_B1 = 8           # row  8     fused first-layer bias (incl. backbone bias)
ROW_B2 = 9           # row  9     fused second-layer bias
WSMALL_ROWS = 16


# ------------------------------- kernel --------------------------------------
def task_moe_kernel(meta_ref, x_ref, wsmall_ref, w2_ref, out_ref):
    tb = out_ref.shape[0]
    b0 = pl.program_id(0) * tb

    xf = x_ref[...].astype(jnp.float32)              # (tb, C*H*W), f32 compute
    wsm = wsmall_ref[...]                            # (16, 128) f32, one aligned load
    b1 = wsm[ROW_B1:ROW_B1 + 1, :]                   # (1, 128) fused 1st-layer bias
    b2 = wsm[ROW_B2:ROW_B2 + 1, :]                   # (1, 128) fused 2nd-layer bias

    # ---- fused backbone (GAP + Linear) + gate + three expert first layers ---
    # z = b1 + sum_c pooled_sum_c * W_catp[c]   (backbone & 1/HW folded in)
    z = jnp.zeros((tb, LANES), jnp.float32)
    for c in range(C):
        s_c = jnp.sum(xf[:, c * HW2:(c + 1) * HW2], axis=-1, keepdims=True)  # (tb,1)
        z = z + s_c * wsm[ROW_WCATP + c:ROW_WCATP + c + 1, :]
    z = z + b1                                                                # (tb,128)

    # ReLU over the whole fused activation: the gate columns feed all-zero
    # rows of the block-diagonal W2, so clipping them is harmless.
    h16 = jnp.maximum(z, 0.0).astype(jnp.bfloat16)   # bf16 MXU input

    # ---- fused block-diagonal expert second layers: one bf16 MXU matmul ----
    out_all = jnp.dot(h16, w2_ref[...],
                      preferred_element_type=jnp.float32) + b2               # (tb,128)

    # ---- rebuild per-sample ds / label from the SMEM scalar-prefetch array -
    row = jax.lax.broadcasted_iota(jnp.int32, (tb, 1), 0)
    ds_v = jnp.zeros((tb, 1), jnp.int32)
    lab_v = jnp.zeros((tb, 1), jnp.int32)
    for r in range(tb):
        ds_v = jnp.where(row == r, meta_ref[2 * (b0 + r)], ds_v)
        lab_v = jnp.where(row == r, meta_ref[2 * (b0 + r) + 1], lab_v)

    col = jax.lax.broadcasted_iota(jnp.int32, (tb, LANES), 1)

    # ---- gate softmax weight at index ds (mask BEFORE exp, EUP reciprocal) -
    gate_valid = col < NEXPERT
    zg = jnp.where(gate_valid, z, jnp.float32(NEG))
    gmax = jnp.max(zg, axis=-1, keepdims=True)                               # (tb,1)
    gexp = jnp.exp(jnp.where(gate_valid, z - gmax, jnp.float32(NEG)))
    gsum = jnp.sum(gexp, axis=-1, keepdims=True)
    gsel = jnp.sum(jnp.where(col == ds_v, gexp, 0.0), axis=-1, keepdims=True)
    gw = gsel * pl.reciprocal(gsum, approx=True)                             # (tb,1)

    # ---- per-sample valid class window inside the fused expert output ------
    # NOTE: ds outside {0,1,2} falls back to the expert-2 window (the PyTorch
    # reference would raise); callers must pass valid task ids.
    ncls = jnp.full_like(ds_v, NCLS[2])
    ncls = jnp.where(ds_v == 1, NCLS[1], ncls)
    ncls = jnp.where(ds_v == 0, NCLS[0], ncls)
    base = ds_v * NPAD                                                       # (tb,1)
    valid = (col >= base) & (col < base + ncls)                              # (tb,128)

    # ---- task output = gate_weight[d] * expert_d(feature) ------------------
    task = gw * out_all
    task_m = jnp.where(valid, task, jnp.float32(NEG))
    tmax = jnp.max(task_m, axis=-1, keepdims=True)

    # prediction: first (lowest-index) max among the valid classes
    rel = col - base
    pred = jnp.min(jnp.where(task_m >= tmax, rel, jnp.int32(LANES)),
                   axis=-1, keepdims=True)                                   # (tb,1)

    # per-sample cross-entropy (wrapper sums over the real batch rows)
    exps = jnp.exp(task_m - tmax)            # invalid lanes: exp(-1e30) == 0
    lse = tmax + jnp.log(jnp.sum(exps, axis=-1, keepdims=True))
    logit_y = jnp.sum(jnp.where(col == base + lab_v, task_m, 0.0),
                      axis=-1, keepdims=True)
    ce = lse - logit_y                                                       # (tb,1)

    # ---- lane-dense output slab: col 0 = pred (f32), col 1 = per-sample CE -
    res = jnp.where(col == 0, pred.astype(jnp.float32), 0.0)
    res = jnp.where(col == 1, ce, res)
    out_ref[...] = res


# ------------------------- parameter packing (once) ---------------------------
def quantize_params(p):
    """bf16 storage precision policy for every parameter (f32 accumulation)."""
    return {k: v.astype(jnp.bfloat16).astype(jnp.float32) for k, v in p.items()}


def pack_params(pq):
    """Fuse / pad the (bf16-rounded) TaskMoE parameters into two DMA slabs."""
    hw = float(H * W)

    w_cat = jnp.zeros((DIM, LANES), jnp.float32)
    b_cat = jnp.zeros((1, LANES), jnp.float32)
    w_cat = w_cat.at[:, 0:NEXPERT].set(pq["wg"])
    b_cat = b_cat.at[:, 0:NEXPERT].set(pq["bg"])
    w2_blk = jnp.zeros((LANES, LANES), jnp.float32)
    b2_cat = jnp.zeros((1, LANES), jnp.float32)
    for e in range(NEXPERT):
        c0 = HID0 + e * DIM
        w_cat = w_cat.at[:, c0:c0 + DIM].set(pq["w1"][e])
        b_cat = b_cat.at[:, c0:c0 + DIM].set(pq["b1"][e])
        w2_blk = w2_blk.at[c0:c0 + DIM, e * NPAD:(e + 1) * NPAD].set(pq["w2"][e])
        b2_cat = b2_cat.at[:, e * NPAD:(e + 1) * NPAD].set(pq["b2"][e])

    # fold the backbone bias and the (GAP-scaled) backbone weight into the
    # fused first layer (exact algebra, f32 host math)
    b_cat = pq["bb"] @ w_cat + b_cat                                # (1, 128)
    w_catp = (pq["wb"] / hw) @ w_cat                                # (C, 128)

    wsmall = jnp.zeros((WSMALL_ROWS, LANES), jnp.float32)
    wsmall = wsmall.at[ROW_WCATP:ROW_WCATP + C, :].set(w_catp)
    wsmall = wsmall.at[ROW_B1, :].set(b_cat[0])
    wsmall = wsmall.at[ROW_B2, :].set(b2_cat[0])

    return dict(wsmall=wsmall,                                      # (16,128) f32
                w2_blk=w2_blk.astype(jnp.bfloat16))                 # (128,128) bf16


# ------------------------------- wrapper --------------------------------------
def task_moe_forward(x, ds, label, packed, *, tb=TB):
    """x: (B, C, H, W) f32, ds: (B,) int32, label: (B,) int32."""
    b = x.shape[0]
    b_pad = ((b + tb - 1) // tb) * tb
    nb = b_pad // tb

    xf = x.reshape(b, CHW).astype(jnp.bfloat16)
    if b_pad != b:
        xf = jnp.pad(xf, ((0, b_pad - b), (0, 0)))

    # ds/label packed into one small SMEM scalar-prefetch array
    meta = jnp.zeros((2 * b_pad,), jnp.int32)
    meta = meta.at[0:2 * b:2].set(ds.astype(jnp.int32))
    meta = meta.at[1:2 * b:2].set(label.astype(jnp.int32))

    out = pl.pallas_call(
        task_moe_kernel,
        out_shape=jax.ShapeDtypeStruct((b_pad, LANES), jnp.float32),
        grid_spec=pltpu.PrefetchScalarGridSpec(
            num_scalar_prefetch=1,
            grid=(nb,),
            in_specs=[
                pl.BlockSpec((tb, CHW), lambda i, meta: (i, 0)),             # x block
                pl.BlockSpec((WSMALL_ROWS, LANES), lambda i, meta: (0, 0)),  # resident
                pl.BlockSpec((LANES, LANES), lambda i, meta: (0, 0)),        # resident
            ],
            out_specs=pl.BlockSpec((tb, LANES), lambda i, meta: (i, 0)),
        ),
        compiler_params=pltpu.CompilerParams(
            dimension_semantics=("parallel",)),
    )(meta, xf, packed["wsmall"], packed["w2_blk"])

    pred = out[:b, 0].astype(jnp.int32)          # (B,)
    loss = jnp.sum(out[:b, 1])                   # scalar (sum of per-sample CE)
    return pred, loss


# -------------------------- deterministic params -------------------------------
def make_params(key):
    keys = jax.random.split(key, 12)
    scale = 0.1
    wb = scale * jax.random.normal(keys[0], (C, DIM), jnp.float32)
    bb = scale * jax.random.normal(keys[1], (1, DIM), jnp.float32)
    wg = scale * jax.random.normal(keys[2], (DIM, NEXPERT), jnp.float32)
    bg = scale * jax.random.normal(keys[3], (1, NEXPERT), jnp.float32)
    w1 = scale * jax.random.normal(keys[4], (NEXPERT, DIM, DIM), jnp.float32)
    b1 = scale * jax.random.normal(keys[5], (NEXPERT, 1, DIM), jnp.float32)
    w2 = jnp.zeros((NEXPERT, DIM, NPAD), jnp.float32)
    b2 = jnp.zeros((NEXPERT, 1, NPAD), jnp.float32)
    for e in range(NEXPERT):
        w2 = w2.at[e, :, :NCLS[e]].set(
            scale * jax.random.normal(keys[6 + e], (DIM, NCLS[e]), jnp.float32))
        b2 = b2.at[e, :, :NCLS[e]].set(
            scale * jax.random.normal(keys[9 + e], (1, NCLS[e]), jnp.float32))
    return dict(wb=wb, bb=bb, wg=wg, bg=bg, w1=w1, b1=b1, w2=w2, b2=b2)


# ----------------------------- pure-JAX reference ------------------------------
def reference(x, ds, label, p):
    """TaskMoE forward with the PyTorch per-sample structure, under the same
    precision policy as the kernel: bf16-stored params/x (passed in already
    rounded), f32 math, bf16 cast of the expert hidden right before the
    second Linear (the kernel's bf16 MXU input)."""
    xq = x.astype(jnp.bfloat16).astype(jnp.float32)
    gap = jnp.mean(xq.reshape(B, C, -1), axis=-1)
    feat = gap @ p["wb"] + p["bb"]
    preds, loss = [], 0.0
    for i in range(B):
        f = feat[i:i + 1]
        g = jax.nn.softmax(f @ p["wg"] + p["bg"], axis=1)
        e = int(ds[i])
        h = jnp.maximum(f @ p["w1"][e] + p["b1"][e], 0.0)
        h = h.astype(jnp.bfloat16).astype(jnp.float32)   # mirror kernel MXU input
        o = h @ p["w2"][e][:, :NCLS[e]] + p["b2"][e][:, :NCLS[e]]
        t = g[0, e] * o
        preds.append(jnp.argmax(t, axis=1))
        lse = jax.nn.logsumexp(t, axis=1)[0]
        loss = loss + (lse - t[0, int(label[i])])
    return jnp.concatenate(preds), loss


# --------------------------------- main ----------------------------------------
if __name__ == "__main__":
    key = jax.random.PRNGKey(0)
    k_x, k_p, k_l = jax.random.split(key, 3)

    x = jax.random.normal(k_x, (B, C, H, W), jnp.float32)
    ds = jnp.array([0, 1, 2, 1], jnp.int32)               # task id per sample
    # labels are valid class indices for the selected expert
    raw = jax.random.randint(k_l, (B,), 0, 1_000_000)
    ncls_per = jnp.array([NCLS[int(d)] for d in ds], jnp.int32)
    label = (raw % ncls_per).astype(jnp.int32)

    params = make_params(k_p)
    params_q = quantize_params(params)     # bf16 storage policy (kernel precision)
    packed = pack_params(params_q)

    pred, loss = task_moe_forward(x, ds, label, packed)
    jax.block_until_ready((pred, loss))

    pred_ref, loss_ref = reference(x, ds, label, params_q)
    assert jnp.array_equal(pred, pred_ref.astype(jnp.int32)), (pred, pred_ref)
    assert jnp.allclose(loss, loss_ref, rtol=1e-3, atol=1e-3), (loss, loss_ref)

    print("KERNEL_OK")
</pallas_src>

<mosaic_0001>
module attributes {stable_mosaic.version = 11 : i64} {
  func.func @task_moe_kernel(%arg0: i32, %arg1: memref<32xi32, #tpu.memory_space<smem>>, %arg2: memref<16x1024xbf16, #tpu.memory_space<vmem>>, %arg3: memref<16x128xf32, #tpu.memory_space<vmem>>, %arg4: memref<128x128xbf16, #tpu.memory_space<vmem>>, %arg5: memref<16x128xf32, #tpu.memory_space<vmem>>) attributes {dimension_semantics = [#tpu.dimension_semantics<parallel>], iteration_bounds = array<i64: 1>, scalar_prefetch = 1 : i64, scratch_operands = 0 : i64, tpu.core_type = #tpu.core_type<tc>, window_params = [{transform_indices = @transform_0, window_bounds = array<i64: 16, 1024>}, {pipeline_mode = #tpu.pipeline_mode<synchronous>, transform_indices = @transform_1, window_bounds = array<i64: 16, 128>}, {pipeline_mode = #tpu.pipeline_mode<synchronous>, transform_indices = @transform_2, window_bounds = array<i64: 128, 128>}, {transform_indices = @transform_3, window_bounds = array<i64: 16, 128>}]} {
    %c16_i32 = arith.constant 16 : i32
    %0 = arith.muli %arg0, %c16_i32 : i32
    %c0 = arith.constant 0 : index
    %c0_0 = arith.constant 0 : index
    %1 = vector.load %arg2[%c0, %c0_0] : memref<16x1024xbf16, #tpu.memory_space<vmem>>, vector<16x1024xbf16>
    %2 = arith.extf %1 : vector<16x1024xbf16> to vector<16x1024xf32>
    %c0_1 = arith.constant 0 : index
    %c0_2 = arith.constant 0 : index
    %3 = vector.load %arg3[%c0_1, %c0_2] : memref<16x128xf32, #tpu.memory_space<vmem>>, vector<16x128xf32>
    %4 = vector.extract_strided_slice %3 {offsets = [8, 0], sizes = [1, 128], strides = [1, 1]} : vector<16x128xf32> to vector<1x128xf32>
    %5 = vector.extract_strided_slice %3 {offsets = [9, 0], sizes = [1, 128], strides = [1, 1]} : vector<16x128xf32> to vector<1x128xf32>
    %cst = arith.constant 0.000000e+00 : f32
    %6 = vector.broadcast %cst : f32 to vector<16x128xf32>
    %7 = vector.extract_strided_slice %2 {offsets = [0, 0], sizes = [16, 256], strides = [1, 1]} : vector<16x1024xf32> to vector<16x256xf32>
    %cst_3 = arith.constant dense<0.000000e+00> : vector<16xf32>
    %8 = vector.multi_reduction <add>, %7, %cst_3 [1] : vector<16x256xf32> to vector<16xf32>
    %9 = vector.shape_cast %8 : vector<16xf32> to vector<16x1xf32>
    %10 = vector.extract_strided_slice %3 {offsets = [0, 0], sizes = [1, 128], strides = [1, 1]} : vector<16x128xf32> to vector<1x128xf32>
    %11 = vector.broadcast %9 : vector<16x1xf32> to vector<16x128xf32>
    %12 = vector.broadcast %10 : vector<1x128xf32> to vector<16x128xf32>
    %13 = arith.mulf %11, %12 : vector<16x128xf32>
    %14 = arith.addf %6, %13 : vector<16x128xf32>
    %15 = vector.extract_strided_slice %2 {offsets = [0, 256], sizes = [16, 256], strides = [1, 1]} : vector<16x1024xf32> to vector<16x256xf32>
    %cst_4 = arith.constant dense<0.000000e+00> : vector<16xf32>
    %16 = vector.multi_reduction <add>, %15, %cst_4 [1] : vector<16x256xf32> to vector<16xf32>
    %17 = vector.shape_cast %16 : vector<16xf32> to vector<16x1xf32>
    %18 = vector.extract_strided_slice %3 {offsets = [1, 0], sizes = [1, 128], strides = [1, 1]} : vector<16x128xf32> to vector<1x128xf32>
    %19 = vector.broadcast %17 : vector<16x1xf32> to vector<16x128xf32>
    %20 = vector.broadcast %18 : vector<1x128xf32> to vector<16x128xf32>
    %21 = arith.mulf %19, %20 : vector<16x128xf32>
    %22 = arith.addf %14, %21 : vector<16x128xf32>
    %23 = vector.extract_strided_slice %2 {offsets = [0, 512], sizes = [16, 256], strides = [1, 1]} : vector<16x1024xf32> to vector<16x256xf32>
    %cst_5 = arith.constant dense<0.000000e+00> : vector<16xf32>
    %24 = vector.multi_reduction <add>, %23, %cst_5 [1] : vector<16x256xf32> to vector<16xf32>
    %25 = vector.shape_cast %24 : vector<16xf32> to vector<16x1xf32>
    %26 = vector.extract_strided_slice %3 {offsets = [2, 0], sizes = [1, 128], strides = [1, 1]} : vector<16x128xf32> to vector<1x128xf32>
    %27 = vector.broadcast %25 : vector<16x1xf32> to vector<16x128xf32>
    %28 = vector.broadcast %26 : vector<1x128xf32> to vector<16x128xf32>
    %29 = arith.mulf %27, %28 : vector<16x128xf32>
    %30 = arith.addf %22, %29 : vector<16x128xf32>
    %31 = vector.extract_strided_slice %2 {offsets = [0, 768], sizes = [16, 256], strides = [1, 1]} : vector<16x1024xf32> to vector<16x256xf32>
    %cst_6 = arith.constant dense<0.000000e+00> : vector<16xf32>
    %32 = vector.multi_reduction <add>, %31, %cst_6 [1] : vector<16x256xf32> to vector<16xf32>
    %33 = vector.shape_cast %32 : vector<16xf32> to vector<16x1xf32>
    %34 = vector.extract_strided_slice %3 {offsets = [3, 0], sizes = [1, 128], strides = [1, 1]} : vector<16x128xf32> to vector<1x128xf32>
    %35 = vector.broadcast %33 : vector<16x1xf32> to vector<16x128xf32>
    %36 = vector.broadcast %34 : vector<1x128xf32> to vector<16x128xf32>
    %37 = arith.mulf %35, %36 : vector<16x128xf32>
    %38 = arith.addf %30, %37 : vector<16x128xf32>
    %39 = vector.broadcast %4 : vector<1x128xf32> to vector<16x128xf32>
    %40 = arith.addf %38, %39 : vector<16x128xf32>
    %cst_7 = arith.constant 0.000000e+00 : f32
    %41 = vector.broadcast %cst_7 : f32 to vector<16x128xf32>
    %42 = arith.maximumf %40, %41 : vector<16x128xf32>
    %43 = arith.truncf %42 : vector<16x128xf32> to vector<16x128xbf16>
    %c0_8 = arith.constant 0 : index
    %c0_9 = arith.constant 0 : index
    %44 = vector.load %arg4[%c0_8, %c0_9] : memref<128x128xbf16, #tpu.memory_space<vmem>>, vector<128x128xbf16>
    %cst_10 = arith.constant dense<0.000000e+00> : vector<16x128xf32>
    %45 = tpu.matmul %43, %44, %cst_10 {dimension_numbers = #tpu.dot_dimension_numbers<[1], [0], [0], [1], [0, 0, 1, 1], [], []>} : vector<16x128xbf16>, vector<128x128xbf16>, vector<16x128xf32> -> vector<16x128xf32>
    %46 = vector.broadcast %5 : vector<1x128xf32> to vector<16x128xf32>
    %47 = arith.addf %45, %46 : vector<16x128xf32>
    %48 = tpu.iota {dimensions = array<i32: 0>} : vector<16x1xi32>
    %c0_i32 = arith.constant 0 : i32
    %49 = vector.broadcast %c0_i32 : i32 to vector<16x1xi32>
    %c0_i32_11 = arith.constant 0 : i32
    %50 = vector.broadcast %c0_i32_11 : i32 to vector<16x1xi32>
    %c0_i32_12 = arith.constant 0 : i32
    %51 = vector.broadcast %c0_i32_12 : i32 to vector<16x1xi32>
    %52 = arith.cmpi eq, %48, %51 : vector<16x1xi32>
    %c0_i32_13 = arith.constant 0 : i32
    %53 = arith.addi %0, %c0_i32_13 : i32
    %c2_i32 = arith.constant 2 : i32
    %54 = arith.muli %c2_i32, %53 : i32
    %55 = arith.index_cast %54 : i32 to index
    %56 = memref.load %arg1[%55] : memref<32xi32, #tpu.memory_space<smem>>
    %57 = vector.broadcast %56 : i32 to vector<16x1xi32>
    %58 = arith.select %52, %57, %49 : vector<16x1xi1>, vector<16x1xi32>
    %c0_i32_14 = arith.constant 0 : i32
    %59 = vector.broadcast %c0_i32_14 : i32 to vector<16x1xi32>
    %60 = arith.cmpi eq, %48, %59 : vector<16x1xi32>
    %c0_i32_15 = arith.constant 0 : i32
    %61 = arith.addi %0, %c0_i32_15 : i32
    %c2_i32_16 = arith.constant 2 : i32
    %62 = arith.muli %c2_i32_16, %61 : i32
    %c1_i32 = arith.constant 1 : i32
    %63 = arith.addi %62, %c1_i32 : i32
    %64 = arith.index_cast %63 : i32 to index
    %65 = memref.load %arg1[%64] : memref<32xi32, #tpu.memory_space<smem>>
    %66 = vector.broadcast %65 : i32 to vector<16x1xi32>
    %67 = arith.select %60, %66, %50 : vector<16x1xi1>, vector<16x1xi32>
    %c1_i32_17 = arith.constant 1 : i32
    %68 = vector.broadcast %c1_i32_17 : i32 to vector<16x1xi32>
    %69 = arith.cmpi eq, %48, %68 : vector<16x1xi32>
    %c1_i32_18 = arith.constant 1 : i32
    %70 = arith.addi %0, %c1_i32_18 : i32
    %c2_i32_19 = arith.constant 2 : i32
    %71 = arith.muli %c2_i32_19, %70 : i32
    %72 = arith.index_cast %71 : i32 to index
    %73 = memref.load %arg1[%72] : memref<32xi32, #tpu.memory_space<smem>>
    %74 = vector.broadcast %73 : i32 to vector<16x1xi32>
    %75 = arith.select %69, %74, %58 : vector<16x1xi1>, vector<16x1xi32>
    %c1_i32_20 = arith.constant 1 : i32
    %76 = vector.broadcast %c1_i32_20 : i32 to vector<16x1xi32>
    %77 = arith.cmpi eq, %48, %76 : vector<16x1xi32>
    %c1_i32_21 = arith.constant 1 : i32
    %78 = arith.addi %0, %c1_i32_21 : i32
    %c2_i32_22 = arith.constant 2 : i32
    %79 = arith.muli %c2_i32_22, %78 : i32
    %c1_i32_23 = arith.constant 1 : i32
    %80 = arith.addi %79, %c1_i32_23 : i32
    %81 = arith.index_cast %80 : i32 to index
    %82 = memref.load %arg1[%81] : memref<32xi32, #tpu.memory_space<smem>>
    %83 = vector.broadcast %82 : i32 to vector<16x1xi32>
    %84 = arith.select %77, %83, %67 : vector<16x1xi1>, vector<16x1xi32>
    %c2_i32_24 = arith.constant 2 : i32
    %85 = vector.broadcast %c2_i32_24 : i32 to vector<16x1xi32>
    %86 = arith.cmpi eq, %48, %85 : vector<16x1xi32>
    %c2_i32_25 = arith.constant 2 : i32
    %87 = arith.addi %0, %c2_i32_25 : i32
    %c2_i32_26 = arith.constant 2 : i32
    %88 = arith.muli %c2_i32_26, %87 : i32
    %89 = arith.index_cast %88 : i32 to index
    %90 = memref.load %arg1[%89] : memref<32xi32, #tpu.memory_space<smem>>
    %91 = vector.broadcast %90 : i32 to vector<16x1xi32>
    %92 = arith.select %86, %91, %75 : vector<16x1xi1>, vector<16x1xi32>
    %c2_i32_27 = arith.constant 2 : i32
    %93 = vector.broadcast %c2_i32_27 : i32 to vector<16x1xi32>
    %94 = arith.cmpi eq, %48, %93 : vector<16x1xi32>
    %c2_i32_28 = arith.constant 2 : i32
    %95 = arith.addi %0, %c2_i32_28 : i32
    %c2_i32_29 = arith.constant 2 : i32
    %96 = arith.muli %c2_i32_29, %95 : i32
    %c1_i32_30 = arith.constant 1 : i32
    %97 = arith.addi %96, %c1_i32_30 : i32
    %98 = arith.index_cast %97 : i32 to index
    %99 = memref.load %arg1[%98] : memref<32xi32, #tpu.memory_space<smem>>
    %100 = vector.broadcast %99 : i32 to vector<16x1xi32>
    %101 = arith.select %94, %100, %84 : vector<16x1xi1>, vector<16x1xi32>
    %c3_i32 = arith.constant 3 : i32
    %102 = vector.broadcast %c3_i32 : i32 to vector<16x1xi32>
    %103 = arith.cmpi eq, %48, %102 : vector<16x1xi32>
    %c3_i32_31 = arith.constant 3 : i32
    %104 = arith.addi %0, %c3_i32_31 : i32
    %c2_i32_32 = arith.constant 2 : i32
    %105 = arith.muli %c2_i32_32, %104 : i32
    %106 = arith.index_cast %105 : i32 to index
    %107 = memref.load %arg1[%106] : memref<32xi32, #tpu.memory_space<smem>>
    %108 = vector.broadcast %107 : i32 to vector<16x1xi32>
    %109 = arith.select %103, %108, %92 : vector<16x1xi1>, vector<16x1xi32>
    %c3_i32_33 = arith.constant 3 : i32
    %110 = vector.broadcast %c3_i32_33 : i32 to vector<16x1xi32>
    %111 = arith.cmpi eq, %48, %110 : vector<16x1xi32>
    %c3_i32_34 = arith.constant 3 : i32
    %112 = arith.addi %0, %c3_i32_34 : i32
    %c2_i32_35 = arith.constant 2 : i32
    %113 = arith.muli %c2_i32_35, %112 : i32
    %c1_i32_36 = arith.constant 1 : i32
    %114 = arith.addi %113, %c1_i32_36 : i32
    %115 = arith.index_cast %114 : i32 to index
    %116 = memref.load %arg1[%115] : memref<32xi32, #tpu.memory_space<smem>>
    %117 = vector.broadcast %116 : i32 to vector<16x1xi32>
    %118 = arith.select %111, %117, %101 : vector<16x1xi1>, vector<16x1xi32>
    %c4_i32 = arith.constant 4 : i32
    %119 = vector.broadcast %c4_i32 : i32 to vector<16x1xi32>
    %120 = arith.cmpi eq, %48, %119 : vector<16x1xi32>
    %c4_i32_37 = arith.constant 4 : i32
    %121 = arith.addi %0, %c4_i32_37 : i32
    %c2_i32_38 = arith.constant 2 : i32
    %122 = arith.muli %c2_i32_38, %121 : i32
    %123 = arith.index_cast %122 : i32 to index
    %124 = memref.load %arg1[%123] : memref<32xi32, #tpu.memory_space<smem>>
    %125 = vector.broadcast %124 : i32 to vector<16x1xi32>
    %126 = arith.select %120, %125, %109 : vector<16x1xi1>, vector<16x1xi32>
    %c4_i32_39 = arith.constant 4 : i32
    %127 = vector.broadcast %c4_i32_39 : i32 to vector<16x1xi32>
    %128 = arith.cmpi eq, %48, %127 : vector<16x1xi32>
    %c4_i32_40 = arith.constant 4 : i32
    %129 = arith.addi %0, %c4_i32_40 : i32
    %c2_i32_41 = arith.constant 2 : i32
    %130 = arith.muli %c2_i32_41, %129 : i32
    %c1_i32_42 = arith.constant 1 : i32
    %131 = arith.addi %130, %c1_i32_42 : i32
    %132 = arith.index_cast %131 : i32 to index
    %133 = memref.load %arg1[%132] : memref<32xi32, #tpu.memory_space<smem>>
    %134 = vector.broadcast %133 : i32 to vector<16x1xi32>
    %135 = arith.select %128, %134, %118 : vector<16x1xi1>, vector<16x1xi32>
    %c5_i32 = arith.constant 5 : i32
    %136 = vector.broadcast %c5_i32 : i32 to vector<16x1xi32>
    %137 = arith.cmpi eq, %48, %136 : vector<16x1xi32>
    %c5_i32_43 = arith.constant 5 : i32
    %138 = arith.addi %0, %c5_i32_43 : i32
    %c2_i32_44 = arith.constant 2 : i32
    %139 = arith.muli %c2_i32_44, %138 : i32
    %140 = arith.index_cast %139 : i32 to index
    %141 = memref.load %arg1[%140] : memref<32xi32, #tpu.memory_space<smem>>
    %142 = vector.broadcast %141 : i32 to vector<16x1xi32>
    %143 = arith.select %137, %142, %126 : vector<16x1xi1>, vector<16x1xi32>
    %c5_i32_45 = arith.constant 5 : i32
    %144 = vector.broadcast %c5_i32_45 : i32 to vector<16x1xi32>
    %145 = arith.cmpi eq, %48, %144 : vector<16x1xi32>
    %c5_i32_46 = arith.constant 5 : i32
    %146 = arith.addi %0, %c5_i32_46 : i32
    %c2_i32_47 = arith.constant 2 : i32
    %147 = arith.muli %c2_i32_47, %146 : i32
    %c1_i32_48 = arith.constant 1 : i32
    %148 = arith.addi %147, %c1_i32_48 : i32
    %149 = arith.index_cast %148 : i32 to index
    %150 = memref.load %arg1[%149] : memref<32xi32, #tpu.memory_space<smem>>
    %151 = vector.broadcast %150 : i32 to vector<16x1xi32>
    %152 = arith.select %145, %151, %135 : vector<16x1xi1>, vector<16x1xi32>
    %c6_i32 = arith.constant 6 : i32
    %153 = vector.broadcast %c6_i32 : i32 to vector<16x1xi32>
    %154 = arith.cmpi eq, %48, %153 : vector<16x1xi32>
    %c6_i32_49 = arith.constant 6 : i32
    %155 = arith.addi %0, %c6_i32_49 : i32
    %c2_i32_50 = arith.constant 2 : i32
    %156 = arith.muli %c2_i32_50, %155 : i32
    %157 = arith.index_cast %156 : i32 to index
    %158 = memref.load %arg1[%157] : memref<32xi32, #tpu.memory_space<smem>>
    %159 = vector.broadcast %158 : i32 to vector<16x1xi32>
    %160 = arith.select %154, %159, %143 : vector<16x1xi1>, vector<16x1xi32>
    %c6_i32_51 = arith.constant 6 : i32
    %161 = vector.broadcast %c6_i32_51 : i32 to vector<16x1xi32>
    %162 = arith.cmpi eq, %48, %161 : vector<16x1xi32>
    %c6_i32_52 = arith.constant 6 : i32
    %163 = arith.addi %0, %c6_i32_52 : i32
    %c2_i32_53 = arith.constant 2 : i32
    %164 = arith.muli %c2_i32_53, %163 : i32
    %c1_i32_54 = arith.constant 1 : i32
    %165 = arith.addi %164, %c1_i32_54 : i32
    %166 = arith.index_cast %165 : i32 to index
    %167 = memref.load %arg1[%166] : memref<32xi32, #tpu.memory_space<smem>>
    %168 = vector.broadcast %167 : i32 to vector<16x1xi32>
    %169 = arith.select %162, %168, %152 : vector<16x1xi1>, vector<16x1xi32>
    %c7_i32 = arith.constant 7 : i32
    %170 = vector.broadcast %c7_i32 : i32 to vector<16x1xi32>
    %171 = arith.cmpi eq, %48, %170 : vector<16x1xi32>
    %c7_i32_55 = arith.constant 7 : i32
    %172 = arith.addi %0, %c7_i32_55 : i32
    %c2_i32_56 = arith.constant 2 : i32
    %173 = arith.muli %c2_i32_56, %172 : i32
    %174 = arith.index_cast %173 : i32 to index
    %175 = memref.load %arg1[%174] : memref<32xi32, #tpu.memory_space<smem>>
    %176 = vector.broadcast %175 : i32 to vector<16x1xi32>
    %177 = arith.select %171, %176, %160 : vector<16x1xi1>, vector<16x1xi32>
    %c7_i32_57 = arith.constant 7 : i32
    %178 = vector.broadcast %c7_i32_57 : i32 to vector<16x1xi32>
    %179 = arith.cmpi eq, %48, %178 : vector<16x1xi32>
    %c7_i32_58 = arith.constant 7 : i32
    %180 = arith.addi %0, %c7_i32_58 : i32
    %c2_i32_59 = arith.constant 2 : i32
    %181 = arith.muli %c2_i32_59, %180 : i32
    %c1_i32_60 = arith.constant 1 : i32
    %182 = arith.addi %181, %c1_i32_60 : i32
    %183 = arith.index_cast %182 : i32 to index
    %184 = memref.load %arg1[%183] : memref<32xi32, #tpu.memory_space<smem>>
    %185 = vector.broadcast %184 : i32 to vector<16x1xi32>
    %186 = arith.select %179, %185, %169 : vector<16x1xi1>, vector<16x1xi32>
    %c8_i32 = arith.constant 8 : i32
    %187 = vector.broadcast %c8_i32 : i32 to vector<16x1xi32>
    %188 = arith.cmpi eq, %48, %187 : vector<16x1xi32>
    %c8_i32_61 = arith.constant 8 : i32
    %189 = arith.addi %0, %c8_i32_61 : i32
    %c2_i32_62 = arith.constant 2 : i32
    %190 = arith.muli %c2_i32_62, %189 : i32
    %191 = arith.index_cast %190 : i32 to index
    %192 = memref.load %arg1[%191] : memref<32xi32, #tpu.memory_space<smem>>
    %193 = vector.broadcast %192 : i32 to vector<16x1xi32>
    %194 = arith.select %188, %193, %177 : vector<16x1xi1>, vector<16x1xi32>
    %c8_i32_63 = arith.constant 8 : i32
    %195 = vector.broadcast %c8_i32_63 : i32 to vector<16x1xi32>
    %196 = arith.cmpi eq, %48, %195 : vector<16x1xi32>
    %c8_i32_64 = arith.constant 8 : i32
    %197 = arith.addi %0, %c8_i32_64 : i32
    %c2_i32_65 = arith.constant 2 : i32
    %198 = arith.muli %c2_i32_65, %197 : i32
    %c1_i32_66 = arith.constant 1 : i32
    %199 = arith.addi %198, %c1_i32_66 : i32
    %200 = arith.index_cast %199 : i32 to index
    %201 = memref.load %arg1[%200] : memref<32xi32, #tpu.memory_space<smem>>
    %202 = vector.broadcast %201 : i32 to vector<16x1xi32>
    %203 = arith.select %196, %202, %186 : vector<16x1xi1>, vector<16x1xi32>
    %c9_i32 = arith.constant 9 : i32
    %204 = vector.broadcast %c9_i32 : i32 to vector<16x1xi32>
    %205 = arith.cmpi eq, %48, %204 : vector<16x1xi32>
    %c9_i32_67 = arith.constant 9 : i32
    %206 = arith.addi %0, %c9_i32_67 : i32
    %c2_i32_68 = arith.constant 2 : i32
    %207 = arith.muli %c2_i32_68, %206 : i32
    %208 = arith.index_cast %207 : i32 to index
    %209 = memref.load %arg1[%208] : memref<32xi32, #tpu.memory_space<smem>>
    %210 = vector.broadcast %209 : i32 to vector<16x1xi32>
    %211 = arith.select %205, %210, %194 : vector<16x1xi1>, vector<16x1xi32>
    %c9_i32_69 = arith.constant 9 : i32
    %212 = vector.broadcast %c9_i32_69 : i32 to vector<16x1xi32>
    %213 = arith.cmpi eq, %48, %212 : vector<16x1xi32>
    %c9_i32_70 = arith.constant 9 : i32
    %214 = arith.addi %0, %c9_i32_70 : i32
    %c2_i32_71 = arith.constant 2 : i32
    %215 = arith.muli %c2_i32_71, %214 : i32
    %c1_i32_72 = arith.constant 1 : i32
    %216 = arith.addi %215, %c1_i32_72 : i32
    %217 = arith.index_cast %216 : i32 to index
    %218 = memref.load %arg1[%217] : memref<32xi32, #tpu.memory_space<smem>>
    %219 = vector.broadcast %218 : i32 to vector<16x1xi32>
    %220 = arith.select %213, %219, %203 : vector<16x1xi1>, vector<16x1xi32>
    %c10_i32 = arith.constant 10 : i32
    %221 = vector.broadcast %c10_i32 : i32 to vector<16x1xi32>
    %222 = arith.cmpi eq, %48, %221 : vector<16x1xi32>
    %c10_i32_73 = arith.constant 10 : i32
    %223 = arith.addi %0, %c10_i32_73 : i32
    %c2_i32_74 = arith.constant 2 : i32
    %224 = arith.muli %c2_i32_74, %223 : i32
    %225 = arith.index_cast %224 : i32 to index
    %226 = memref.load %arg1[%225] : memref<32xi32, #tpu.memory_space<smem>>
    %227 = vector.broadcast %226 : i32 to vector<16x1xi32>
    %228 = arith.select %222, %227, %211 : vector<16x1xi1>, vector<16x1xi32>
    %c10_i32_75 = arith.constant 10 : i32
    %229 = vector.broadcast %c10_i32_75 : i32 to vector<16x1xi32>
    %230 = arith.cmpi eq, %48, %229 : vector<16x1xi32>
    %c10_i32_76 = arith.constant 10 : i32
    %231 = arith.addi %0, %c10_i32_76 : i32
    %c2_i32_77 = arith.constant 2 : i32
    %232 = arith.muli %c2_i32_77, %231 : i32
    %c1_i32_78 = arith.constant 1 : i32
    %233 = arith.addi %232, %c1_i32_78 : i32
    %234 = arith.index_cast %233 : i32 to index
    %235 = memref.load %arg1[%234] : memref<32xi32, #tpu.memory_space<smem>>
    %236 = vector.broadcast %235 : i32 to vector<16x1xi32>
    %237 = arith.select %230, %236, %220 : vector<16x1xi1>, vector<16x1xi32>
    %c11_i32 = arith.constant 11 : i32
    %238 = vector.broadcast %c11_i32 : i32 to vector<16x1xi32>
    %239 = arith.cmpi eq, %48, %238 : vector<16x1xi32>
    %c11_i32_79 = arith.constant 11 : i32
    %240 = arith.addi %0, %c11_i32_79 : i32
    %c2_i32_80 = arith.constant 2 : i32
    %241 = arith.muli %c2_i32_80, %240 : i32
    %242 = arith.index_cast %241 : i32 to index
    %243 = memref.load %arg1[%242] : memref<32xi32, #tpu.memory_space<smem>>
    %244 = vector.broadcast %243 : i32 to vector<16x1xi32>
    %245 = arith.select %239, %244, %228 : vector<16x1xi1>, vector<16x1xi32>
    %c11_i32_81 = arith.constant 11 : i32
    %246 = vector.broadcast %c11_i32_81 : i32 to vector<16x1xi32>
    %247 = arith.cmpi eq, %48, %246 : vector<16x1xi32>
    %c11_i32_82 = arith.constant 11 : i32
    %248 = arith.addi %0, %c11_i32_82 : i32
    %c2_i32_83 = arith.constant 2 : i32
    %249 = arith.muli %c2_i32_83, %248 : i32
    %c1_i32_84 = arith.constant 1 : i32
    %250 = arith.addi %249, %c1_i32_84 : i32
    %251 = arith.index_cast %250 : i32 to index
    %252 = memref.load %arg1[%251] : memref<32xi32, #tpu.memory_space<smem>>
    %253 = vector.broadcast %252 : i32 to vector<16x1xi32>
    %254 = arith.select %247, %253, %237 : vector<16x1xi1>, vector<16x1xi32>
    %c12_i32 = arith.constant 12 : i32
    %255 = vector.broadcast %c12_i32 : i32 to vector<16x1xi32>
    %256 = arith.cmpi eq, %48, %255 : vector<16x1xi32>
    %c12_i32_85 = arith.constant 12 : i32
    %257 = arith.addi %0, %c12_i32_85 : i32
    %c2_i32_86 = arith.constant 2 : i32
    %258 = arith.muli %c2_i32_86, %257 : i32
    %259 = arith.index_cast %258 : i32 to index
    %260 = memref.load %arg1[%259] : memref<32xi32, #tpu.memory_space<smem>>
    %261 = vector.broadcast %260 : i32 to vector<16x1xi32>
    %262 = arith.select %256, %261, %245 : vector<16x1xi1>, vector<16x1xi32>
    %c12_i32_87 = arith.constant 12 : i32
    %263 = vector.broadcast %c12_i32_87 : i32 to vector<16x1xi32>
    %264 = arith.cmpi eq, %48, %263 : vector<16x1xi32>
    %c12_i32_88 = arith.constant 12 : i32
    %265 = arith.addi %0, %c12_i32_88 : i32
    %c2_i32_89 = arith.constant 2 : i32
    %266 = arith.muli %c2_i32_89, %265 : i32
    %c1_i32_90 = arith.constant 1 : i32
    %267 = arith.addi %266, %c1_i32_90 : i32
    %268 = arith.index_cast %267 : i32 to index
    %269 = memref.load %arg1[%268] : memref<32xi32, #tpu.memory_space<smem>>
    %270 = vector.broadcast %269 : i32 to vector<16x1xi32>
    %271 = arith.select %264, %270, %254 : vector<16x1xi1>, vector<16x1xi32>
    %c13_i32 = arith.constant 13 : i32
    %272 = vector.broadcast %c13_i32 : i32 to vector<16x1xi32>
    %273 = arith.cmpi eq, %48, %272 : vector<16x1xi32>
    %c13_i32_91 = arith.constant 13 : i32
    %274 = arith.addi %0, %c13_i32_91 : i32
    %c2_i32_92 = arith.constant 2 : i32
    %275 = arith.muli %c2_i32_92, %274 : i32
    %276 = arith.index_cast %275 : i32 to index
    %277 = memref.load %arg1[%276] : memref<32xi32, #tpu.memory_space<smem>>
    %278 = vector.broadcast %277 : i32 to vector<16x1xi32>
    %279 = arith.select %273, %278, %262 : vector<16x1xi1>, vector<16x1xi32>
    %c13_i32_93 = arith.constant 13 : i32
    %280 = vector.broadcast %c13_i32_93 : i32 to vector<16x1xi32>
    %281 = arith.cmpi eq, %48, %280 : vector<16x1xi32>
    %c13_i32_94 = arith.constant 13 : i32
    %282 = arith.addi %0, %c13_i32_94 : i32
    %c2_i32_95 = arith.constant 2 : i32
    %283 = arith.muli %c2_i32_95, %282 : i32
    %c1_i32_96 = arith.constant 1 : i32
    %284 = arith.addi %283, %c1_i32_96 : i32
    %285 = arith.index_cast %284 : i32 to index
    %286 = memref.load %arg1[%285] : memref<32xi32, #tpu.memory_space<smem>>
    %287 = vector.broadcast %286 : i32 to vector<16x1xi32>
    %288 = arith.select %281, %287, %271 : vector<16x1xi1>, vector<16x1xi32>
    %c14_i32 = arith.constant 14 : i32
    %289 = vector.broadcast %c14_i32 : i32 to vector<16x1xi32>
    %290 = arith.cmpi eq, %48, %289 : vector<16x1xi32>
    %c14_i32_97 = arith.constant 14 : i32
    %291 = arith.addi %0, %c14_i32_97 : i32
    %c2_i32_98 = arith.constant 2 : i32
    %292 = arith.muli %c2_i32_98, %291 : i32
    %293 = arith.index_cast %292 : i32 to index
    %294 = memref.load %arg1[%293] : memref<32xi32, #tpu.memory_space<smem>>
    %295 = vector.broadcast %294 : i32 to vector<16x1xi32>
    %296 = arith.select %290, %295, %279 : vector<16x1xi1>, vector<16x1xi32>
    %c14_i32_99 = arith.constant 14 : i32
    %297 = vector.broadcast %c14_i32_99 : i32 to vector<16x1xi32>
    %298 = arith.cmpi eq, %48, %297 : vector<16x1xi32>
    %c14_i32_100 = arith.constant 14 : i32
    %299 = arith.addi %0, %c14_i32_100 : i32
    %c2_i32_101 = arith.constant 2 : i32
    %300 = arith.muli %c2_i32_101, %299 : i32
    %c1_i32_102 = arith.constant 1 : i32
    %301 = arith.addi %300, %c1_i32_102 : i32
    %302 = arith.index_cast %301 : i32 to index
    %303 = memref.load %arg1[%302] : memref<32xi32, #tpu.memory_space<smem>>
    %304 = vector.broadcast %303 : i32 to vector<16x1xi32>
    %305 = arith.select %298, %304, %288 : vector<16x1xi1>, vector<16x1xi32>
    %c15_i32 = arith.constant 15 : i32
    %306 = vector.broadcast %c15_i32 : i32 to vector<16x1xi32>
    %307 = arith.cmpi eq, %48, %306 : vector<16x1xi32>
    %c15_i32_103 = arith.constant 15 : i32
    %308 = arith.addi %0, %c15_i32_103 : i32
    %c2_i32_104 = arith.constant 2 : i32
    %309 = arith.muli %c2_i32_104, %308 : i32
    %310 = arith.index_cast %309 : i32 to index
    %311 = memref.load %arg1[%310] : memref<32xi32, #tpu.memory_space<smem>>
    %312 = vector.broadcast %311 : i32 to vector<16x1xi32>
    %313 = arith.select %307, %312, %296 : vector<16x1xi1>, vector<16x1xi32>
    %c15_i32_105 = arith.constant 15 : i32
    %314 = vector.broadcast %c15_i32_105 : i32 to vector<16x1xi32>
    %315 = arith.cmpi eq, %48, %314 : vector<16x1xi32>
    %c15_i32_106 = arith.constant 15 : i32
    %316 = arith.addi %0, %c15_i32_106 : i32
    %c2_i32_107 = arith.constant 2 : i32
    %317 = arith.muli %c2_i32_107, %316 : i32
    %c1_i32_108 = arith.constant 1 : i32
    %318 = arith.addi %317, %c1_i32_108 : i32
    %319 = arith.index_cast %318 : i32 to index
    %320 = memref.load %arg1[%319] : memref<32xi32, #tpu.memory_space<smem>>
    %321 = vector.broadcast %320 : i32 to vector<16x1xi32>
    %322 = arith.select %315, %321, %305 : vector<16x1xi1>, vector<16x1xi32>
    %323 = tpu.iota {dimensions = array<i32: 1>} : vector<16x128xi32>
    %c3_i32_109 = arith.constant 3 : i32
    %324 = vector.broadcast %c3_i32_109 : i32 to vector<16x128xi32>
    %325 = arith.cmpi slt, %323, %324 : vector<16x128xi32>
    %cst_110 = arith.constant -1.000000e+30 : f32
    %326 = vector.broadcast %cst_110 : f32 to vector<16x128xf32>
    %327 = arith.select %325, %40, %326 : vector<16x128xi1>, vector<16x128xf32>
    %cst_111 = arith.constant dense<0xFF800000> : vector<16xf32>
    %328 = vector.multi_reduction <maximumf>, %327, %cst_111 [1] : vector<16x128xf32> to vector<16xf32>
    %329 = vector.shape_cast %328 : vector<16xf32> to vector<16x1xf32>
    %330 = vector.broadcast %329 : vector<16x1xf32> to vector<16x128xf32>
    %331 = arith.subf %40, %330 : vector<16x128xf32>
    %cst_112 = arith.constant -1.000000e+30 : f32
    %332 = vector.broadcast %cst_112 : f32 to vector<16x128xf32>
    %333 = arith.select %325, %331, %332 : vector<16x128xi1>, vector<16x128xf32>
    %334 = math.exp %333 : vector<16x128xf32>
    %cst_113 = arith.constant dense<0.000000e+00> : vector<16xf32>
    %335 = vector.multi_reduction <add>, %334, %cst_113 [1] : vector<16x128xf32> to vector<16xf32>
    %336 = vector.shape_cast %335 : vector<16xf32> to vector<16x1xf32>
    %337 = vector.broadcast %313 : vector<16x1xi32> to vector<16x128xi32>
    %338 = arith.cmpi eq, %323, %337 : vector<16x128xi32>
    %cst_114 = arith.constant 0.000000e+00 : f32
    %339 = vector.broadcast %cst_114 : f32 to vector<16x128xf32>
    %340 = arith.select %338, %334, %339 : vector<16x128xi1>, vector<16x128xf32>
    %cst_115 = arith.constant dense<0.000000e+00> : vector<16xf32>
    %341 = vector.multi_reduction <add>, %340, %cst_115 [1] : vector<16x128xf32> to vector<16xf32>
    %342 = vector.shape_cast %341 : vector<16xf32> to vector<16x1xf32>
    %343 = tpu.reciprocal %336 {approx = true} : vector<16x1xf32> -> vector<16x1xf32>
    %344 = arith.mulf %342, %343 : vector<16x1xf32>
    %c2_i32_116 = arith.constant 2 : i32
    %345 = vector.broadcast %c2_i32_116 : i32 to vector<16x1xi32>
    %c1_i32_117 = arith.constant 1 : i32
    %346 = vector.broadcast %c1_i32_117 : i32 to vector<16x1xi32>
    %347 = arith.cmpi eq, %313, %346 : vector<16x1xi32>
    %c6_i32_118 = arith.constant 6 : i32
    %348 = vector.broadcast %c6_i32_118 : i32 to vector<16x1xi32>
    %349 = arith.select %347, %348, %345 : vector<16x1xi1>, vector<16x1xi32>
    %c0_i32_119 = arith.constant 0 : i32
    %350 = vector.broadcast %c0_i32_119 : i32 to vector<16x1xi32>
    %351 = arith.cmpi eq, %313, %350 : vector<16x1xi32>
    %c10_i32_120 = arith.constant 10 : i32
    %352 = vector.broadcast %c10_i32_120 : i32 to vector<16x1xi32>
    %353 = arith.select %351, %352, %349 : vector<16x1xi1>, vector<16x1xi32>
    %c16_i32_121 = arith.constant 16 : i32
    %354 = vector.broadcast %c16_i32_121 : i32 to vector<16x1xi32>
    %355 = arith.muli %313, %354 : vector<16x1xi32>
    %356 = vector.broadcast %355 : vector<16x1xi32> to vector<16x128xi32>
    %357 = arith.cmpi sge, %323, %356 : vector<16x128xi32>
    %358 = arith.addi %355, %353 : vector<16x1xi32>
    %359 = vector.broadcast %358 : vector<16x1xi32> to vector<16x128xi32>
    %360 = arith.cmpi slt, %323, %359 : vector<16x128xi32>
    %361 = arith.andi %357, %360 : vector<16x128xi1>
    %362 = vector.broadcast %344 : vector<16x1xf32> to vector<16x128xf32>
    %363 = arith.mulf %362, %47 : vector<16x128xf32>
    %cst_122 = arith.constant -1.000000e+30 : f32
    %364 = vector.broadcast %cst_122 : f32 to vector<16x128xf32>
    %365 = arith.select %361, %363, %364 : vector<16x128xi1>, vector<16x128xf32>
    %cst_123 = arith.constant dense<0xFF800000> : vector<16xf32>
    %366 = vector.multi_reduction <maximumf>, %365, %cst_123 [1] : vector<16x128xf32> to vector<16xf32>
    %367 = vector.shape_cast %366 : vector<16xf32> to vector<16x1xf32>
    %368 = vector.broadcast %355 : vector<16x1xi32> to vector<16x128xi32>
    %369 = arith.subi %323, %368 : vector<16x128xi32>
    %370 = vector.broadcast %367 : vector<16x1xf32> to vector<16x128xf32>
    %371 = arith.cmpf oge, %365, %370 : vector<16x128xf32>
    %c128_i32 = arith.constant 128 : i32
    %372 = vector.broadcast %c128_i32 : i32 to vector<16x128xi32>
    %373 = arith.select %371, %369, %372 : vector<16x128xi1>, vector<16x128xi32>
    %cst_124 = arith.constant dense<2147483647> : vector<16xi32>
    %374 = vector.multi_reduction <minsi>, %373, %cst_124 [1] : vector<16x128xi32> to vector<16xi32>
    %375 = vector.shape_cast %374 : vector<16xi32> to vector<16x1xi32>
    %376 = vector.broadcast %367 : vector<16x1xf32> to vector<16x128xf32>
    %377 = arith.subf %365, %376 : vector<16x128xf32>
    %378 = math.exp %377 : vector<16x128xf32>
    %cst_125 = arith.constant dense<0.000000e+00> : vector<16xf32>
    %379 = vector.multi_reduction <add>, %378, %cst_125 [1] : vector<16x128xf32> to vector<16xf32>
    %380 = vector.shape_cast %379 : vector<16xf32> to vector<16x1xf32>
    %381 = math.log %380 : vector<16x1xf32>
    %382 = arith.addf %367, %381 : vector<16x1xf32>
    %383 = arith.addi %355, %322 : vector<16x1xi32>
    %384 = vector.broadcast %383 : vector<16x1xi32> to vector<16x128xi32>
    %385 = arith.cmpi eq, %323, %384 : vector<16x128xi32>
    %cst_126 = arith.constant 0.000000e+00 : f32
    %386 = vector.broadcast %cst_126 : f32 to vector<16x128xf32>
    %387 = arith.select %385, %365, %386 : vector<16x128xi1>, vector<16x128xf32>
    %cst_127 = arith.constant dense<0.000000e+00> : vector<16xf32>
    %388 = vector.multi_reduction <add>, %387, %cst_127 [1] : vector<16x128xf32> to vector<16xf32>
    %389 = vector.shape_cast %388 : vector<16xf32> to vector<16x1xf32>
    %390 = arith.subf %382, %389 : vector<16x1xf32>
    %c0_i32_128 = arith.constant 0 : i32
    %391 = vector.broadcast %c0_i32_128 : i32 to vector<16x128xi32>
    %392 = arith.cmpi eq, %323, %391 : vector<16x128xi32>
    %393 = arith.sitofp %375 : vector<16x1xi32> to vector<16x1xf32>
    %cst_129 = arith.constant 0.000000e+00 : f32
    %394 = vector.shape_cast %393 : vector<16x1xf32> to vector<16x1xf32>
    %395 = vector.broadcast %394 : vector<16x1xf32> to vector<16x128xf32>
    %396 = vector.broadcast %cst_129 : f32 to vector<16x128xf32>
    %397 = arith.select %392, %395, %396 : vector<16x128xi1>, vector<16x128xf32>
    %c1_i32_130 = arith.constant 1 : i32
    %398 = vector.broadcast %c1_i32_130 : i32 to vector<16x128xi32>
    %399 = arith.cmpi eq, %323, %398 : vector<16x128xi32>
    %400 = vector.shape_cast %390 : vector<16x1xf32> to vector<16x1xf32>
    %401 = vector.broadcast %400 : vector<16x1xf32> to vector<16x128xf32>
    %402 = arith.select %399, %401, %397 : vector<16x128xi1>, vector<16x128xf32>
    %c0_131 = arith.constant 0 : index
    %c0_132 = arith.constant 0 : index
    %403 = vector.load %arg5[%c0_131, %c0_132] : memref<16x128xf32, #tpu.memory_space<vmem>>, vector<16x128xf32>
    tpu.vector_store %arg5[%c0_131, %c0_132], %402 {strides = array<i32>} : memref<16x128xf32, #tpu.memory_space<vmem>>, vector<16x128xf32>,
    return
  }
  func.func @transform_0(%arg0: i32, %arg1: memref<32xi32, #tpu.memory_space<smem>>) -> (i32, i32) {
    %c0_i32 = arith.constant 0 : i32
    %c0_i32_0 = arith.constant 0 : i32
    return %arg0, %c0_i32 : i32, i32
  }
  func.func @transform_1(%arg0: i32, %arg1: memref<32xi32, #tpu.memory_space<smem>>) -> (i32, i32) {
    %c0_i32 = arith.constant 0 : i32
    %c0_i32_0 = arith.constant 0 : i32
    %c0_i32_1 = arith.constant 0 : i32
    return %c0_i32, %c0_i32_0 : i32, i32
  }
  func.func @transform_2(%arg0: i32, %arg1: memref<32xi32, #tpu.memory_space<smem>>) -> (i32, i32) {
    %c0_i32 = arith.constant 0 : i32
    %c0_i32_0 = arith.constant 0 : i32
    %c0_i32_1 = arith.constant 0 : i32
    return %c0_i32, %c0_i32_0 : i32, i32
  }
  func.func @transform_3(%arg0: i32, %arg1: memref<32xi32, #tpu.memory_space<smem>>) -> (i32, i32) {
    %c0_i32 = arith.constant 0 : i32
    %c0_i32_0 = arith.constant 0 : i32
    return %arg0, %c0_i32 : i32, i32
  }
}

</mosaic_0001>

<bundles_post_ra>
// kernel: tpu_custom_call.1
= control target key start
LH: loop header
LB: loop body
LE: loop exit
PB: predicated region body
PF: predicated region fallthrough
CT: control target
= control target key end

     0   :  { %s824_s15 = smov [#allocation3]   ;;  %s1084_s0 = inlined_call_operand.hbm [shape: s32[32], index: 0, kind: input, shape index: {}]   ;;  %s1085_s1 = inlined_call_operand.hbm [shape: bf16[16,1024], index: 1, kind: input, shape index: {}]   ;;  %s1086_s2 = inlined_call_operand.hbm [shape: f32[16,128], index: 2, kind: input, shape index: {}]   ;;  %s1087_s3 = inlined_call_operand.hbm [shape: bf16[128,128], index: 3, kind: input, shape index: {}]   ;;  %s1088_s4 = inlined_call_operand.hbm [shape: f32[16,128], index: 4, kind: output, shape index: {}]  }
   0x1   :  { %10 = dma.hbm_to_smem %s1084_s0, 16, %s824_s15, [#allocation2] }
   0x2   :  { %816 = dma.done.wait [#allocation2], 16 }
   0x3   :  { %817 = vsyncadd [#allocation2], 4294967280 }
   0x4   :  { %12 = sfence }
   0x5   :  { %13 = vsyncpa [#allocation5], 0 }
   0x6   :  { %14 = vsyncpa [#allocation8], 0 }
   0x7   :  { %15 = vsyncpa [#allocation6], 0  ;;  %s825_s18 = smov [#allocation7]  }
   0x8   :  { %s33_s19 = sshll.u32 %s825_s18, 4  ;;  %s34_s19 = int_to_ptr.vmem [resolvable:$true] %s33_s19 }
   0x9   :  { %s744_s20 = scalar_lea.vmem %s34_s19, 256  ;;  %p749_p1 = scmp.lt.s32.totalorder %s34_s19, %s34_s19 }
   0xa   :  { %p745_p0 = scmp.ne.s32.totalorder %s34_s19, %s744_s20  ;;  %p750_p2 = scmp.lt.s32.totalorder %s744_s20, %s744_s20 }
   0xc   :  { %p751_p3 = por %p750_p2, %p749_p1 }
   0xe   :  { %p752_p4 = pnand %p751_p3, %p745_p0 }
  0x10   :  { %755 = shalt.err (!%p752_p4)
}
  0x11   :  { %s826_s21 = smov 128   ;;  %s827_s22 = smov 8  }
  0x12   :  { %39 = dma.hbm_to_vmem [thread:$0]  %s1086_s2, 256, %s34_s19, [#allocation8], %s826_s21, %s826_s21, %s827_s22  }
  0x13   :  { %s828_s24 = smov [#allocation4]  }
  0x14   :  { %s21_s25 = sshll.u32 %s828_s24, 4  ;;  %s22_s25 = int_to_ptr.vmem [resolvable:$true] %s21_s25 }
  0x15   :  { %s764_s26 = scalar_lea.vmem %s22_s25, 1024  ;;  %p769_p6 = scmp.lt.s32.totalorder %s22_s25, %s22_s25 }
  0x16   :  { %p765_p5 = scmp.ne.s32.totalorder %s22_s25, %s764_s26  ;;  %p770_p7 = scmp.lt.s32.totalorder %s764_s26, %s764_s26 }
  0x18   :  { %p771_p8 = por %p770_p7, %p769_p6 }
  0x1a   :  { %p772_p9 = pnand %p771_p8, %p765_p5 }
  0x1c   :  { %775 = shalt.err (!%p772_p9)
}
  0x1d   :  { %s829_s27 = smov 512   ;;  %s830_s28 = smov 32  }
  0x1e   :  { %27 = dma.hbm_to_vmem [thread:$0]  %s1085_s1, 1024, %s22_s25, [#allocation5], %s829_s27, %s829_s27, %s830_s28  }
  0x1f   :  { %s831_s5 = smov [#allocation9]  }
  0x20   :  { %s45_s6 = sshll.u32 %s831_s5, 4  ;;  %s46_s6 = int_to_ptr.vmem [resolvable:$true] %s45_s6 }
  0x21   :  { %s784_s2 = scalar_lea.vmem %s46_s6, 1024  ;;  %p789_p11 = scmp.lt.s32.totalorder %s46_s6, %s46_s6 }
  0x22   :  { %p785_p10 = scmp.ne.s32.totalorder %s46_s6, %s784_s2  ;;  %p790_p12 = scmp.lt.s32.totalorder %s784_s2, %s784_s2 }
  0x24   :  { %p791_p13 = por %p790_p12, %p789_p11 }
  0x26   :  { %p792_p0 = pnand %p791_p13, %p785_p10 }
  0x28   :  { %795 = shalt.err (!%p792_p0)
}
  0x29   :  { %s832_s7 = smov 64   ;;  %s833_s8 = smov 4  }
  0x2a   :  { %51 = dma.hbm_to_vmem [thread:$0]  %s1087_s3, 1024, %s46_s6, [#allocation8], %s832_s7, %s832_s7, %s833_s8  }
  0x2b   :  { %818 = dma.done.wait [#allocation5], 1024  }
  0x2c   :  { %819 = vsyncadd [#allocation5], 4294966272 }
  0x2d   :  { %820 = dma.done.wait [#allocation8], 1280  }
  0x2e   :  { %821 = vsyncadd [#allocation8], 4294966016  ;;  %v834_v0 = vmov 0.0   ;;  %v64_v1 = vld [vmem:[#allocation4 + $0x8] sm:$0xff]  ;;  %v63_v2 = vld [vmem:[#allocation4] sm:$0xff]  ;;  %vm835_vm0 = vmmov 0   ;;  %v95_v41 = vlaneseq }
  0x2f   :  { %670 = vmatprep.subr.bf16.mxu0 %v834_v0  ;;  %v68_v3 = vld [vmem:[#allocation4 + $0x28] sm:$0xff]  ;;  %v73_v4 = vunpack.c.l.bf16 %v64_v1  ;;  %v74_v5 = vunpack.c.h.bf16 %v64_v1  ;;  %v71_v6 = vunpack.c.l.bf16 %v63_v2  ;;  %v72_v7 = vunpack.c.h.bf16 %v63_v2  ;;  %v67_v8 = vld [vmem:[#allocation4 + $0x20] sm:$0xff]  ;;  %v69_v9 = vld [vmem:[#allocation4 + $0x30] sm:$0xff]  ;;  %686 = vmatprep.mubr.msk.bf16.mxu0 %vm835_vm0, %v834_v0  ;;  %s645_s1 = sld [smem:[#allocation3 + $0x10]] }
  0x30   :  { %v81_v10 = vunpack.c.l.bf16 %v68_v3  ;;  %v82_v11 = vunpack.c.h.bf16 %v68_v3  ;;  %v79_v12 = vunpack.c.l.bf16 %v67_v8  ;;  %v80_v13 = vunpack.c.h.bf16 %v67_v8  ;;  %v65_v14 = vld [vmem:[#allocation4 + $0x10] sm:$0xff]  ;;  %v704_v17 = vld [vmem:[#allocation9 + $0x38] sm:$0xff]   ;;  %v70_v20 = vld [vmem:[#allocation4 + $0x38] sm:$0xff]  ;;  %s269_s3 = sld [smem:[#allocation3]] }
  0x31   :  { %v103_v15 = vadd.f32 %v74_v5, %v73_v4  ;;  %v89_v16 = vadd.f32 %v72_v7, %v71_v6  ;;  %v83_v18 = vunpack.c.l.bf16 %v69_v9  ;;  %v84_v19 = vunpack.c.h.bf16 %v69_v9  ;;  %v66_v25 = vld [vmem:[#allocation4 + $0x18] sm:$0xff]  ;;  %v705_v26 = vld [vmem:[#allocation9 + $0x30] sm:$0xff]   ;;  %671 = vmatpush3.bf16.msra.mxu0 %v704_v17  ;;  %v707_v36 = vld [vmem:[#allocation9 + $0x20] sm:$0xff]   ;;  %s647_s11 = sld [smem:[#allocation3 + $0x12]] }
  0x32   :  { %v106_v21 = vadd.f32 %v82_v11, %v81_v10  ;;  %v92_v22 = vadd.f32 %v80_v13, %v79_v12  ;;  %v75_v23 = vunpack.c.l.bf16 %v65_v14  ;;  %v76_v24 = vunpack.c.h.bf16 %v65_v14  ;;  %672 = vmatprep.subr.bf16.mxu0 %v834_v0  ;;  %v706_v33 = vld [vmem:[#allocation9 + $0x28] sm:$0xff]   ;;  %v708_v37 = vld [vmem:[#allocation9 + $0x18] sm:$0xff]   ;;  %v709_v38 = vld [vmem:[#allocation9 + $0x10] sm:$0xff]   ;;  %s631_s12 = sld [smem:[#allocation3 + $0x2]] }
  0x33   :  { %104 = vadd.xlane.f32.xlu1 %v103_v15  ;;  %90 = vadd.xlane.f32.xlu0 %v89_v16  ;;  %v120_v27 = vadd.f32 %v84_v19, %v83_v18  ;;  %v85_v28 = vunpack.c.l.bf16 %v70_v20  ;;  %v86_v30 = vunpack.c.h.bf16 %v70_v20  ;;  %v77_v31 = vunpack.c.l.bf16 %v66_v25  ;;  %v710_v39 = vld [vmem:[#allocation9 + $0x8] sm:$0xff]   ;;  %v711_v40 = vld [vmem:[#allocation9] sm:$0xff]   ;;  %v87_v45 = vld [vmem:[#allocation7] sm:$0xff]  ;;  %s649_s13 = sld [smem:[#allocation3 + $0x14]] }
  0x34   :  { %v117_v29 = vadd.f32 %v76_v24, %v75_v23  ;;  %v78_v32 = vunpack.c.h.bf16 %v66_v25  ;;  %v887_v42 = vshrl.u32 %v95_v41, 7  ;;  %v895_v63 = vld [vmem:[#allocation7 + $0x8] sm:$0xff]  ;;  %v898_v6 = vand.u32 127, %v95_v41  ;;  %s908_s14 = sld [smem:[#allocation3 + $0x4]] }
  0x35   :  { %673 = vmatpush3.bf16.msra.mxu0 %v705_v26  ;;  %v134_v34 = vadd.f32 %v86_v30, %v85_v28  ;;  %s911_s15 = sld [smem:[#allocation3 + $0x16]] }
  0x36   :  { %674 = vmatprep.subr.bf16.mxu0 %v834_v0  ;;  %v131_v35 = vadd.f32 %v78_v32, %v77_v31  ;;  %v111_v43 = vsub.s32 1, %v887_v42  ;;  %v97_v44 = vsub.s32 0, %v887_v42  ;;  %v125_v48 = vsub.s32 2, %v887_v42  ;;  %s914_s16 = sld [smem:[#allocation3 + $0x6]] }
  0x37   :  { %107 = vadd.xlane.f32.xlu1 %v106_v21  ;;  %93 = vadd.xlane.f32.xlu0 %v92_v22  ;;  %v139_v54 = vsub.s32 3, %v887_v42  ;;  %vm475_vm1 = vcmp.lt.s32.totalorder %v898_v6, 3  ;;  %v906_v20 = vadd.s32 8, %v887_v42  ;;  %v374_v21 = vstv %s645_s1  ;;  %s919_s17 = sld [smem:[#allocation3 + $0x18]] }
  0x38   :  { %v112_v49 = vrot.slane %v87_v45, %v111_v43  ;;  %v98_v50 = vrot.slane %v87_v45, %v97_v44  ;;  %v126_v53 = vrot.slane %v87_v45, %v125_v48  ;;  %v148_v3 = vrot.slane %v895_v63, %v97_v44  ;;  %s924_s18 = sld [smem:[#allocation3 + $0x8]] }
  0x39   :  { %675 = vmatpush3.bf16.msra.mxu0 %v706_v33  ;;  %vm370_vm2 = vcmp.eq.s32.totalorder %v906_v20, 8  ;;  %vm266_vm3 = vcmp.eq.s32.totalorder %v887_v42, 0  ;;  %v270_v22 = vstv %s269_s3  ;;  %vm383_vm4 = vcmp.eq.s32.totalorder %v906_v20, 9  ;;  %s929_s19 = sld [smem:[#allocation3 + $0x1a]] }
  0x3a   :  { %676 = vmatprep.subr.bf16.mxu0 %v834_v0  ;;  %v376_v23 = vsel %vm370_vm2, %v374_v21, 0  ;;  %v387_v24 = vstv %s647_s11  ;;  %v271_v25 = vsel %vm266_vm3, %v270_v22, 0  ;;  %vm278_vm5 = vcmp.eq.s32.totalorder %v887_v42, 1  ;;  %s935_s20 = sld [smem:[#allocation3 + $0xa]] }
  0x3b   :  { %121 = vadd.xlane.f32.xlu1 %v120_v27  ;;  %118 = vadd.xlane.f32.xlu0 %v117_v29  ;;  %v283_v26 = vstv %s631_s12  ;;  %v389_v27 = vsel %vm383_vm4, %v387_v24, %v376_v23  ;;  %vm396_vm6 = vcmp.eq.s32.totalorder %v906_v20, 10  ;;  %v400_v28 = vstv %s649_s13  ;;  %s657_s0 = sld [smem:[#allocation3 + $0x1c]]  ;;  %s837_s13 = smov [#allocation10]  }
  0x3c   :  { %v284_v31 = vsel %vm278_vm5, %v283_v26, %v271_v25  ;;  %vm291_vm7 = vcmp.eq.s32.totalorder %v887_v42, 2  ;;  %v296_v32 = vstv %s908_s14  ;;  %vm409_vm8 = vcmp.eq.s32.totalorder %v906_v20, 11  ;;  %s641_s23 = sld [smem:[#allocation3 + $0xc]]  ;;  %s609_s14 = sshll.u32 %s837_s13, 4  ;;  %s610_s14 = int_to_ptr.vmem [resolvable:$true] %s609_s14 }
  0x3d   :  { %677 = vmatpush3.bf16.msra.mxu0 %v707_v36  ;;  %v413_v36 = vstv %s911_s15  ;;  %vm304_vm9 = vcmp.eq.s32.totalorder %v887_v42, 3  ;;  %vm422_vm10 = vcmp.eq.s32.totalorder %v906_v20, 12  ;;  %s659_s24 = sld [smem:[#allocation3 + $0x1e]]  ;;  %vm317_vm11 = vcmp.eq.s32.totalorder %v887_v42, 4  ;;  %s796_s15 = scalar_lea.vmem %s610_s14, 256 }
  0x3e   :  { %678 = vmatprep.subr.bf16.mxu0 %v834_v0  ;;  %v322_v48 = vstv %s924_s18  ;;  %s643_s25 = sld [smem:[#allocation3 + $0xe]]  ;;  %vm1094_vm12 = vcmp.eq.s32.totalorder %v906_v20, 13  ;;  %vm1090_vm13 = vcmp.eq.s32.totalorder %v887_v42, 5  ;;  %vm1089_vm14 = vcmp.eq.s32.totalorder %v906_v20, 14  ;;  %p797_p1 = scmp.ne.s32.totalorder %s610_s14, %s796_s15 }
  0x3f   :  { %135 = vadd.xlane.f32.xlu1 %v134_v34  ;;  %132 = vadd.xlane.f32.xlu0 %v131_v35  ;;  %v402_v35 = vsel %vm396_vm6, %v400_v28, %v389_v27  ;;  %vm1092_vm15 = vcmp.eq.s32.totalorder %v887_v42, 6  ;;  %vm1091_vm0 = vcmp.eq.s32.totalorder %v906_v20, 15  ;;  %v173_v21 = vrot.slane %v895_v63, %v111_v43  ;;  %s646_s26 = sld [smem:[#allocation3 + $0x11]]  ;;  %p801_p2 = scmp.lt.s32.totalorder %s610_s14, %s610_s14 }
  0x40   :  { %s630_s27 = sld [smem:[#allocation3 + $0x1]]  ;;  %p802_p3 = scmp.lt.s32.totalorder %s796_s15, %s796_s15 }
  0x41   :  { %679 = vmatpush3.bf16.msra.mxu0 %v708_v37  ;;  %s648_s28 = sld [smem:[#allocation3 + $0x13]] }
  0x42   :  { %680 = vmatprep.subr.bf16.mxu0 %v834_v0  ;;  %s632_s29 = sld [smem:[#allocation3 + $0x3]]  ;;  %p803_p4 = por %p802_p3, %p801_p2 }
  0x43   :  { %s650_s30 = sld [smem:[#allocation3 + $0x15]] }
  0x44   :  { %s634_s5 = sld [smem:[#allocation3 + $0x5]]  ;;  %p804_p5 = pnand %p803_p4, %p797_p1 }
  0x45   :  { %681 = vmatpush3.bf16.msra.mxu0 %v709_v38  ;;  %s652_s6 = sld [smem:[#allocation3 + $0x17]] }
  0x46   :  { %682 = vmatprep.subr.bf16.mxu0 %v834_v0  ;;  %s636_s2 = sld [smem:[#allocation3 + $0x7]] }
  0x47   :  { %s654_s7 = sld [smem:[#allocation3 + $0x19]] }
  0x48   :  { %s638_s8 = sld [smem:[#allocation3 + $0x9]] }
  0x49   :  { %683 = vmatpush3.bf16.msra.mxu0 %v710_v39  ;;  %v297_v39 = vsel %vm291_vm7, %v296_v32, %v284_v31  ;;  %s656_s9 = sld [smem:[#allocation3 + $0x1b]] }
  0x4a   :  { %684 = vmatprep.subr.bf16.mxu0 %v834_v0  ;;  %v140_v0 = vrot.slane %v87_v45, %v139_v54  ;;  %v415_v45 = vsel %vm409_vm8, %v413_v36, %v402_v35  ;;  %v452_v54 = vstv %s657_s0  ;;  %s640_s10 = sld [smem:[#allocation3 + $0xb]] }
  0x4b   :  { %s658_s1 = sld [smem:[#allocation3 + $0x1d]] }
  0x4c   :  { %s642_s3 = sld [smem:[#allocation3 + $0xd]] }
  0x4d   :  { %685 = vmatpush3.bf16.msra.mxu0 %v711_v40  ;;  %v309_v40 = vstv %s914_s16  ;;  %s660_s11 = sld [smem:[#allocation3 + $0x1f]] }
  0x4e   :  { %s644_s12 = sld [smem:[#allocation3 + $0xf]] }
  0xbc   :  { %v105_v46 = vpop.xlane.xlu1 %104  ;;  %v91_v47 = vpop.xlane.xlu0 %90 }
  0xbd   :  { %v113_v55 = vmul.f32 %v112_v49, %v105_v46  ;;  %v99_v56 = vmul.f32 %v98_v50, %v91_v47  ;;  %v426_v46 = vstv %s919_s17  ;;  %v310_v47 = vsel %vm304_vm9, %v309_v40, %v297_v39 }
  0xbf   :  { %v115_v1 = vadd.f32 %v113_v55, %v99_v56  ;;  %v348_v56 = vstv %s641_s23 }
  0xc0   :  { %v108_v51 = vpop.xlane.xlu1 %107  ;;  %v94_v52 = vpop.xlane.xlu0 %93 }
  0xc1   :  { %v114_v57 = vmul.f32 %v112_v49, %v108_v51  ;;  %v100_v58 = vmul.f32 %v98_v50, %v94_v52  ;;  %v428_v49 = vsel %vm422_vm10, %v426_v46, %v415_v45  ;;  %v439_v50 = vstv %s929_s19 }
  0xc2   :  { %v323_v51 = vsel %vm317_vm11, %v322_v48, %v310_v47  ;;  %v335_v52 = vstv %s935_s20 }
  0xc3   :  { %v116_v2 = vadd.f32 %v114_v57, %v100_v58  ;;  %v336_v55 = vsel %vm1090_vm13, %v335_v52, %v323_v51  ;;  %v465_v58 = vstv %s659_s24  ;;  %v275_v51 = vstv %s630_s27 }
  0xc4   :  { %v122_v59 = vpop.xlane.xlu1 %121  ;;  %v119_v60 = vpop.xlane.xlu0 %118 }
  0xc5   :  { %v128_v61 = vmul.f32 %v126_v53, %v122_v59  ;;  %v127_v62 = vmul.f32 %v126_v53, %v119_v60  ;;  %v441_v53 = vsel %vm1094_vm12, %v439_v50, %v428_v49  ;;  %v349_v59 = vsel %vm1092_vm15, %v348_v56, %v336_v55 }
  0xc6   :  { %v454_v57 = vsel %vm1089_vm14, %v452_v54, %v441_v53  ;;  %v361_v60 = vstv %s643_s25  ;;  %v379_v50 = vstv %s646_s26  ;;  %v392_v53 = vstv %s648_s28 }
  0xc7   :  { %v130_v7 = vadd.f32 %v128_v61, %v116_v2  ;;  %v129_v8 = vadd.f32 %v127_v62, %v115_v1  ;;  %v467_v61 = vsel %vm1091_vm0, %v465_v58, %v454_v57  ;;  %v381_v52 = vsel %vm370_vm2, %v379_v50, 0 }
  0xc8   :  { %v136_v4 = vpop.xlane.xlu1 %135  ;;  %v133_v5 = vpop.xlane.xlu0 %132  ;;  %vm495_vm14 = vcmp.eq.s32.totalorder %v898_v6, %v467_v61  ;;  %vm507_vm0 = vcmp.eq.s32.totalorder %v467_v61, 1  ;;  %v276_v54 = vsel %vm266_vm3, %v275_v51, 0  ;;  %v288_v55 = vstv %s632_s29 }
  0xc9   :  { %v142_v9 = vmul.f32 %v140_v0, %v136_v4  ;;  %v141_v10 = vmul.f32 %v140_v0, %v133_v5  ;;  %v394_v56 = vsel %vm383_vm4, %v392_v53, %v381_v52  ;;  %v405_v57 = vstv %s650_s30 }
  0xca   :  { %v289_v58 = vsel %vm278_vm5, %v288_v55, %v276_v54  ;;  %vm1095_vm2 = vcmp.eq.s32.totalorder %v906_v20, 13  ;;  %vm1096_vm3 = vcmp.eq.s32.totalorder %v887_v42, 5  ;;  %vm1097_vm4 = vcmp.eq.s32.totalorder %v906_v20, 14 }
  0xcb   :  { %v144_v11 = vadd.f32 %v142_v9, %v130_v7  ;;  %v143_v12 = vadd.f32 %v141_v10, %v129_v8  ;;  %vm1098_vm5 = vcmp.eq.s32.totalorder %v887_v42, 6 }
  0xcd   :  { %v150_v13 = vadd.f32 %v148_v3, %v144_v11  ;;  %v149_v14 = vadd.f32 %v148_v3, %v143_v12  ;;  %v836_v11 = vmov 2  }
  0xce   :  { %v509_v12 = vsel %vm507_vm0, 6, %v836_v11 }
  0xcf   :  { %v477_v15 = vsel %vm475_vm1, %v150_v13, -1e+30  ;;  %v476_v16 = vsel %vm475_vm1, %v149_v14, -1e+30  ;;  %v151_v17 = vmax.f32 %v149_v14, 0.0  ;;  %v152_v18 = vmax.f32 %v150_v13, 0.0 }
  0xd0   :  { %480 = vmax.xlane.f32.xlu1 %v477_v15  ;;  %478 = vmax.xlane.f32.xlu0 %v476_v16 }
  0xd1   :  { %v153_v19 = vpack.c.bf16 %v152_v18, %v151_v17 }
  0xd3   :  { %687 = vmatmul.mubr.bf16.vlgmr.msra.gmra.mxu0 %v153_v19 }
 0x159   :  { %v481_v29 = vpop.xlane.xlu1 %480  ;;  %v479_v30 = vpop.xlane.xlu0 %478 }
 0x15a   :  { %v483_v33 = vsub.f32 %v150_v13, %v481_v29  ;;  %v482_v34 = vsub.f32 %v149_v14, %v479_v30  ;;  %v983_v14 = vmul.u32 16, %v467_v61 }
 0x15c   :  { %v485_v37 = vsel %vm475_vm1, %v483_v33, -1e+30  ;;  %v484_v38 = vsel %vm475_vm1, %v482_v34, -1e+30  ;;  %vm1093_vm1 = vcmp.eq.s32.totalorder %v887_v42, 7  ;;  %v533_v32 = vsub.s32 %v898_v6, %v983_v14 }
 0x15d   :  { %v488_v41 = vmul.f32 1.442695, %v485_v37  ;;  %v486_v44 = vmul.f32 1.442695, %v484_v38  ;;  %v362_v62 = vsel %vm1093_vm1, %v361_v60, %v349_v59  ;;  %vm511_vm1 = vcmp.eq.s32.totalorder %v467_v61, 0 }
 0x15e   :  { %vm494_vm13 = vcmp.eq.s32.totalorder %v898_v6, %v362_v62  ;;  %vm506_vm15 = vcmp.eq.s32.totalorder %v362_v62, 1  ;;  %vm510_vm12 = vcmp.eq.s32.totalorder %v362_v62, 0  ;;  %v985_v15 = vmul.u32 16, %v362_v62 }
 0x15f   :  { %712 = vpow2.f32 %v488_v41  ;;  %v508_v13 = vsel %vm506_vm15, 6, %v836_v11  ;;  %v513_v16 = vsel %vm511_vm1, 10, %v509_v12  ;;  %v301_v59 = vstv %s634_s5 }
 0x160   :  { %714 = vpow2.f32 %v486_v44  ;;  %v512_v17 = vsel %vm510_vm12, 10, %v508_v13  ;;  %v519_v18 = vadd.s32 %v983_v14, %v513_v16  ;;  %vm516_vm15 = vcmp.ge.s32.totalorder %v898_v6, %v985_v15 }
 0x161   :  { %v518_v19 = vadd.s32 %v985_v15, %v512_v17  ;;  %v532_v33 = vsub.s32 %v898_v6, %v985_v15  ;;  %v407_v60 = vsel %vm396_vm6, %v405_v57, %v394_v56  ;;  %v418_v61 = vstv %s652_s6 }
 0x162   :  { %v302_v62 = vsel %vm291_vm7, %v301_v59, %v289_v58  ;;  %v457_v11 = vstv %s658_s1  ;;  %v353_v13 = vstv %s642_s3  ;;  %v470_v17 = vstv %s660_s11 }
 0x163   :  { %vm520_vm12 = vcmp.lt.s32.totalorder %v898_v6, %v518_v19  ;;  %v366_v19 = vstv %s644_s12  ;;  %vm1099_vm6 = vcmp.eq.s32.totalorder %v906_v20, 15  ;;  %vm1100_vm7 = vcmp.eq.s32.totalorder %v887_v42, 7 }
 0x164   :  { %vm522_vm1 = vmand %vm516_vm15, %vm520_vm12  ;;  %vm594_vm15 = vcmp.eq.s32.totalorder %v898_v6, 0  ;;  %vm599_vm12 = vcmp.eq.s32.totalorder %v898_v6, 1 }
 0x16c   :  { %v713_v0 = vpop.eup %712 }
 0x16d   :  { %v715_v1 = vpop.eup %714  ;;  %492 = vadd.xlane.f32.xlu1 %v713_v0  ;;  %v497_v2 = vsel %vm495_vm14, %v713_v0, 0.0  ;;  %vm521_vm14 = vcmp.lt.s32.totalorder %v898_v6, %v519_v18  ;;  %v314_v0 = vstv %s636_s2 }
 0x16e   :  { %490 = vadd.xlane.f32.xlu0 %v715_v1  ;;  %v496_v3 = vsel %vm494_vm13, %v715_v1, 0.0  ;;  %vm517_vm13 = vcmp.ge.s32.totalorder %v898_v6, %v983_v14  ;;  %v420_v1 = vsel %vm409_vm8, %v418_v61, %v407_v60 }
 0x16f   :  { %vm523_vm0 = vmand %vm517_vm13, %vm521_vm14 }
 0x171   :  { %500 = vadd.xlane.f32.xlu1 %v497_v2  ;;  %v431_v2 = vstv %s654_s7 }
 0x172   :  { %498 = vadd.xlane.f32.xlu0 %v496_v3  ;;  %v315_v3 = vsel %vm304_vm9, %v314_v0, %v302_v62 }
 0x193   :  { %v256_v4 = vpop.f32.mrf.mxu0 }
 0x194   :  { %v257_v28 = vadd.f32 %v256_v4, %v173_v21  ;;  %v327_v4 = vstv %s638_s8 }
 0x195   :  { %v688_v5 = vpop.f32.mrf.mxu0 }
 0x196   :  { %v433_v5 = vsel %vm422_vm10, %v431_v2, %v420_v1 }
 0x197   :  { %v259_v7 = vpop.f32.mrf.mxu0 }
 0x198   :  { %v260_v25 = vadd.f32 %v259_v7, %v173_v21  ;;  %v444_v7 = vstv %s656_s9 }
 0x199   :  { %v689_v8 = vpop.f32.mrf.mxu0 }
 0x19a   :  { %v328_v8 = vsel %vm317_vm11, %v327_v4, %v315_v3 }
 0x1f6   :  { %v493_v9 = vpop.xlane.xlu1 %492 }
 0x1f7   :  { %716 = vrcp.f32 %v493_v9  ;;  %v491_v10 = vpop.xlane.xlu0 %490  ;;  %v340_v9 = vstv %s640_s10 }
 0x1f8   :  { %718 = vrcp.f32 %v491_v10  ;;  %v446_v10 = vsel %vm1095_vm2, %v444_v7, %v433_v5  ;;  %v341_v12 = vsel %vm1096_vm3, %v340_v9, %v328_v8 }
 0x1f9   :  { %v459_v16 = vsel %vm1097_vm4, %v457_v11, %v446_v10  ;;  %v354_v18 = vsel %vm1098_vm5, %v353_v13, %v341_v12 }
 0x1fa   :  { %v501_v23 = vpop.xlane.xlu1 %500 }
 0x1fb   :  { %v499_v27 = vpop.xlane.xlu0 %498 }
 0x204   :  { %v717_v22 = vpop.eup %716 }
 0x205   :  { %v719_v24 = vpop.eup %718  ;;  %v505_v26 = vmul.f32 %v717_v22, %v501_v23  ;;  %v472_v22 = vsel %vm1099_vm6, %v470_v17, %v459_v16 }
 0x206   :  { %v504_v29 = vmul.f32 %v719_v24, %v499_v27  ;;  %v367_v24 = vsel %vm1100_vm7, %v366_v19, %v354_v18 }
 0x207   :  { %v525_v43 = vmul.f32 %v505_v26, %v260_v25  ;;  %v583_v25 = vadd.s32 %v983_v14, %v472_v22 }
 0x208   :  { %v524_v63 = vmul.f32 %v504_v29, %v257_v28  ;;  %v582_v28 = vadd.s32 %v985_v15, %v367_v24 }
 0x209   :  { %v998_v30 = vsel %vm523_vm0, %v525_v43, -1e+30  ;;  %vm585_vm10 = vcmp.eq.s32.totalorder %v898_v6, %v583_v25 }
 0x20a   :  { %v1000_v31 = vsel %vm522_vm1, %v524_v63, -1e+30  ;;  %530 = vmax.xlane.f32.xlu1 %v998_v30  ;;  %vm584_vm11 = vcmp.eq.s32.totalorder %v898_v6, %v582_v28  ;;  %v587_v42 = vsel %vm585_vm10, %v998_v30, 0.0 }
 0x20b   :  { %528 = vmax.xlane.f32.xlu0 %v1000_v31  ;;  %v586_v14 = vsel %vm584_vm11, %v1000_v31, 0.0 }
 0x293   :  { %v1008_v34 = vpop.xlane.xlu1 %530 }
 0x294   :  { %v1010_v35 = vpop.xlane.xlu0 %528  ;;  %vm535_vm13 = vcmp.ge.f32.partialorder %v998_v30, %v1008_v34  ;;  %v567_v36 = vsub.f32 %v998_v30, %v1008_v34 }
 0x295   :  { %vm534_vm14 = vcmp.ge.f32.partialorder %v1000_v31, %v1010_v35  ;;  %v566_v37 = vsub.f32 %v1000_v31, %v1010_v35  ;;  %v1020_v38 = vsel %vm535_vm13, %v533_v32, 128 }
 0x296   :  { %v570_v39 = vmul.f32 1.442695, %v567_v36  ;;  %v1022_v40 = vsel %vm534_vm14, %v532_v33, 128  ;;  %v553_v41 = vshra.s32 %v1020_v38, 16  ;;  %v552_v21 = vand.u32 65535, %v1020_v38 }
 0x297   :  { %v568_v44 = vmul.f32 1.442695, %v566_v37  ;;  %v539_v45 = vshra.s32 %v1022_v40, 16  ;;  %v538_v23 = vand.u32 65535, %v1022_v40 }
 0x298   :  { %720 = vpow2.f32 %v570_v39  ;;  %v1026_v46 = vcvt.s32.f32 %v553_v41  ;;  %v554_v27 = vcvt.s32.f32 %v552_v21 }
 0x299   :  { %722 = vpow2.f32 %v568_v44  ;;  %v1028_v47 = vcvt.s32.f32 %v539_v45  ;;  %v540_v43 = vcvt.s32.f32 %v538_v23 }
 0x29a   :  { %556 = vmin.xlane.f32.xlu1 %v1026_v46 }
 0x29b   :  { %542 = vmin.xlane.f32.xlu0 %v1028_v47 }
 0x2a5   :  { %v721_v48 = vpop.eup %720 }
 0x2a6   :  { %v723_v49 = vpop.eup %722  ;;  %574 = vadd.xlane.f32.xlu1 %v721_v48 }
 0x2a7   :  { %572 = vadd.xlane.f32.xlu0 %v723_v49 }
 0x323   :  { %v557_v26 = vpop.xlane.xlu1 %556 }
 0x324   :  { %v543_v29 = vpop.xlane.xlu0 %542  ;;  %vm558_vm8 = vcmp.eq.f32.partialorder %v1026_v46, %v557_v26  ;;  %v563_v37 = vcvt.f32.s32 %v557_v26 }
 0x325   :  { %vm544_vm9 = vcmp.eq.f32.partialorder %v1028_v47, %v543_v29  ;;  %v559_v63 = vsel %vm558_vm8, %v554_v27, inf  ;;  %v549_v38 = vcvt.f32.s32 %v543_v29 }
 0x326   :  { %v545_v20 = vsel %vm544_vm9, %v540_v43, inf  ;;  %560 = vmin.xlane.f32.xlu1 %v559_v63  ;;  %v564_v44 = vshll.u32 %v563_v37, 16 }
 0x327   :  { %546 = vmin.xlane.f32.xlu0 %v545_v20  ;;  %v550_v47 = vshll.u32 %v549_v38, 16 }
 0x32a   :  { %590 = vadd.xlane.f32.xlu1 %v587_v42 }
 0x32b   :  { %588 = vadd.xlane.f32.xlu0 %v586_v14 }
 0x32f   :  { %v575_v15 = vpop.xlane.xlu1 %574 }
 0x330   :  { %v573_v32 = vpop.xlane.xlu0 %572  ;;  %724 = vlog2.f32 %v575_v15 }
 0x331   :  { %726 = vlog2.f32 %v573_v32 }
 0x33d   :  { %v725_v33 = vpop.eup %724 }
 0x33e   :  { %v727_v36 = vpop.eup %726  ;;  %v579_v39 = vmul.f32 0.6931472, %v725_v33 }
 0x33f   :  { %v577_v40 = vmul.f32 0.6931472, %v727_v36 }
 0x340   :  { %v581_v31 = vadd.f32 %v579_v39, %v1008_v34 }
 0x341   :  { %v580_v50 = vadd.f32 %v577_v40, %v1010_v35 }
 0x3af   :  { %v561_v41 = vpop.xlane.xlu1 %560 }
 0x3b0   :  { %v547_v45 = vpop.xlane.xlu0 %546  ;;  %v562_v46 = vcvt.f32.s32 %v561_v41 }
 0x3b1   :  { %v548_v30 = vcvt.f32.s32 %v547_v45 }
 0x3b2   :  { %v565_v48 = vadd.s32 %v564_v44, %v562_v46 }
 0x3b3   :  { %v551_v49 = vadd.s32 %v550_v47, %v548_v30  ;;  %v591_v51 = vpop.xlane.xlu1 %590 }
 0x3b4   :  { %v596_v52 = vcvt.s32.f32 %v565_v48  ;;  %v589_v53 = vpop.xlane.xlu0 %588  ;;  %v593_v54 = vsub.f32 %v581_v31, %v591_v51 }
 0x3b5   :  { %v595_v55 = vcvt.s32.f32 %v551_v49  ;;  %v592_v56 = vsub.f32 %v580_v50, %v589_v53 }
 0x3b6   :  { %v598_v57 = vsel %vm594_vm15, %v596_v52, 0.0 }
 0x3b7   :  { %v597_v58 = vsel %vm594_vm15, %v595_v55, 0.0  ;;  %v601_v59 = vsel %vm599_vm12, %v593_v54, %v598_v57 }
 0x3b8   :  { %v600_v34 = vsel %vm599_vm12, %v592_v56, %v597_v58  ;;  %603 = vst [vmem:[#allocation10 + $0x8] sm:$0xff] %v601_v59 }
 0x3b9   :  { %602 = vst [vmem:[#allocation10] sm:$0xff] %v600_v34 }
 0x3ba   :  { %807 = shalt.err (!%p804_p5)
}
 0x3bb   :  { %615 = dma.vmem_to_hbm [thread:$0]  %s610_s14, 256, %s1088_s4, [#allocation6], %s826_s21, %s826_s21, %s827_s22  }
 0x3bc   :  { %822 = dma.done.wait [#allocation6], 256  }
 0x3bd   :  { %823 = vsyncadd [#allocation6], 4294967040 }
 0x3be   :  { %619 = vsyncpa [#allocation5], 1 }
 0x3bf   :  { %620 = vsyncpa [#allocation8], 1 }
 0x3c0   :  { %621 = vsyncpa [#allocation6], 1 }

</bundles_post_ra>
